<compile_context>
chip_gen: v7x
topology: tpu7x:2x2x1
jax: 0.10.0
libtpu: 0.0.40
codegen_flags: <defaults>
</compile_context>

<pallas_src>
import functools

import numpy as np
import jax
import jax.numpy as jnp
from jax.experimental import pallas as pl
from jax.experimental.pallas import tpu as pltpu


def _bilinear_matrix(in_size: int, out_size: int) -> np.ndarray:
    """nn.Upsample(scale_factor=k, mode='bilinear', align_corners=False) as a matrix."""
    scale = in_size / out_size
    o = np.arange(out_size, dtype=np.float64)
    src = (o + 0.5) * scale - 0.5
    src = np.maximum(src, 0.0)  # PyTorch clamps negative source coords to 0
    i0 = np.minimum(np.floor(src).astype(np.int64), in_size - 1)
    i1 = np.minimum(i0 + 1, in_size - 1)
    lam = (src - i0).astype(np.float32)
    U = np.zeros((out_size, in_size), dtype=np.float32)
    np.add.at(U, (np.arange(out_size), i0), 1.0 - lam)
    np.add.at(U, (np.arange(out_size), i1), lam)
    return U


@functools.lru_cache(maxsize=None)
def _upsample_mats(h: int, w: int, cin: int):
    """Cached host-side construction of the constant upsample matrices."""
    uh = _bilinear_matrix(h, 4 * h)                                   # [Ho, H]
    uwt = np.ascontiguousarray(_bilinear_matrix(w, 4 * w).T)          # [W, Wo]
    # Block-diagonal width-upsample matrix so all Cin channels go through one matmul.
    uwt_blk = np.kron(np.eye(cin, dtype=np.float32), uwt)             # [Cin*W, Cin*Wo]
    return np.ascontiguousarray(uh), np.ascontiguousarray(uwt_blk.astype(np.float32))


def _dfi_kernel(x_ref, uwt_blk_ref, uh_ref, wblk_ref, bias_ref, o_ref):
    # x_ref:       [H, Cin*W]         one image, channels folded into lanes
    # uwt_blk_ref: [Cin*W, Cin*Wo]    blockdiag(Uw^T)  (width upsample)
    # uh_ref:      [Ho, H]            Uh               (height upsample)
    # wblk_ref:    [Cin*Wo, Cout*Wo]  1x1 conv (BN scale folded) as block matrix
    # bias_ref:    [1, Cout*Wo]       conv bias + BN shift, repeated over Wo
    # o_ref:       [Ho, Cout*Wo]
    t = jnp.dot(x_ref[...], uwt_blk_ref[...],
                preferred_element_type=jnp.float32)        # [H,  Cin*Wo]
    t = jnp.dot(uh_ref[...], t,
                preferred_element_type=jnp.float32)        # [Ho, Cin*Wo]
    t = jnp.maximum(t, 0.0)                                # ReLU (between upsample & conv)
    y = jnp.dot(t, wblk_ref[...],
                preferred_element_type=jnp.float32)        # [Ho, Cout*Wo]
    o_ref[...] = (y + bias_ref[...]).astype(o_ref.dtype)   # lane-dense unmasked store


def _dfi_forward(x_nchw, conv_w, conv_b, bn_gamma, bn_beta, bn_mean, bn_var,
                 eps=1e-5):
    N, Cin, H, W = x_nchw.shape
    Cout = conv_w.shape[0]
    Ho, Wo = 4 * H, 4 * W

    uh_np, uwt_blk_np = _upsample_mats(H, W, Cin)
    uh = jnp.asarray(uh_np)                                           # [Ho, H]
    uwt_blk = jnp.asarray(uwt_blk_np)                                 # [Cin*W, Cin*Wo]

    # Fold inference BatchNorm into the conv weight (scale) and bias (shift).
    inv_std = 1.0 / jnp.sqrt(bn_var.astype(jnp.float32) + eps)
    scale = bn_gamma.astype(jnp.float32) * inv_std                    # [Cout]
    w_eff = conv_w.reshape(Cout, Cin).astype(jnp.float32) * scale[:, None]
    b_eff = (bn_beta.astype(jnp.float32)
             + (conv_b.astype(jnp.float32) - bn_mean.astype(jnp.float32)) * scale)

    # 1x1 conv as a block matrix: block (c, d) = w_eff[d, c] * I_Wo.
    w_blk = jnp.kron(w_eff.T, jnp.eye(Wo, dtype=jnp.float32))         # [Cin*Wo, Cout*Wo]
    bias_row = jnp.repeat(b_eff, Wo)[None, :]                         # [1, Cout*Wo]

    # NCHW -> [N, H, Cin*W]: layout plumbing in the wrapper, not the kernel.
    x = x_nchw.astype(jnp.float32).transpose(0, 2, 1, 3).reshape(N, H, Cin * W)

    out = pl.pallas_call(
        _dfi_kernel,
        out_shape=jax.ShapeDtypeStruct((N, Ho, Cout * Wo), jnp.float32),
        grid=(N,),
        in_specs=[
            pl.BlockSpec((None, H, Cin * W), lambda n: (n, 0, 0)),        # x slab
            pl.BlockSpec((Cin * W, Cin * Wo), lambda n: (0, 0)),          # blockdiag(Uw^T)
            pl.BlockSpec((Ho, H), lambda n: (0, 0)),                      # Uh
            pl.BlockSpec((Cin * Wo, Cout * Wo), lambda n: (0, 0)),        # conv block matrix
            pl.BlockSpec((1, Cout * Wo), lambda n: (0, 0)),               # bias row
        ],
        out_specs=pl.BlockSpec((None, Ho, Cout * Wo), lambda n: (n, 0, 0)),
        compiler_params=pltpu.CompilerParams(
            dimension_semantics=("parallel",)),
    )(x, uwt_blk, uh, w_blk, bias_row)

    # [N, Ho, Cout*Wo] -> NCHW [N, Cout, Ho, Wo] (wrapper-side layout plumbing).
    return out.reshape(N, Ho, Cout, Wo).transpose(0, 2, 1, 3)


double_factorized_increase = jax.jit(_dfi_forward, static_argnames=("eps",))


def _reference_np(x, conv_w, conv_b, bn_gamma, bn_beta, bn_mean, bn_var, eps=1e-5):
    """Host-side float64 reference of the same forward pass (NCHW)."""
    x = np.asarray(x, dtype=np.float64)
    N, Cin, H, W = x.shape
    Cout = np.asarray(conv_w).shape[0]
    uh = _bilinear_matrix(H, 4 * H).astype(np.float64)
    uw = _bilinear_matrix(W, 4 * W).astype(np.float64)
    up = np.einsum('oh,nchw->ncow', uh, x)
    up = np.einsum('pw,ncow->ncop', uw, up)
    r = np.maximum(up, 0.0)
    w = np.asarray(conv_w, np.float64).reshape(Cout, Cin)
    y = np.einsum('dc,ncop->ndop', w, r) \
        + np.asarray(conv_b, np.float64)[None, :, None, None]
    inv_std = 1.0 / np.sqrt(np.asarray(bn_var, np.float64) + eps)
    y = ((y - np.asarray(bn_mean, np.float64)[None, :, None, None])
         * (np.asarray(bn_gamma, np.float64) * inv_std)[None, :, None, None]
         + np.asarray(bn_beta, np.float64)[None, :, None, None])
    return y


if __name__ == "__main__":
    key = jax.random.PRNGKey(0)
    k_x, k_w, k_b, k_g, k_bt, k_m, k_v = jax.random.split(key, 7)

    N, Cin, H, W = 2, 4, 16, 16
    Cout = 8

    x = jax.random.normal(k_x, (N, Cin, H, W), dtype=jnp.float32)

    conv_w = 0.1 * jax.random.normal(k_w, (Cout, Cin, 1, 1), dtype=jnp.float32)
    conv_b = 0.1 * jax.random.normal(k_b, (Cout,), dtype=jnp.float32)
    bn_gamma = jax.random.uniform(k_g, (Cout,), minval=0.5, maxval=1.5,
                                  dtype=jnp.float32)
    bn_beta = 0.1 * jax.random.normal(k_bt, (Cout,), dtype=jnp.float32)
    bn_mean = 0.1 * jax.random.normal(k_m, (Cout,), dtype=jnp.float32)
    bn_var = jax.random.uniform(k_v, (Cout,), minval=0.5, maxval=1.5,
                                dtype=jnp.float32)

    out = double_factorized_increase(x, conv_w, conv_b, bn_gamma, bn_beta,
                                     bn_mean, bn_var)
    out = jax.block_until_ready(out)

    ref = _reference_np(np.asarray(x), np.asarray(conv_w), np.asarray(conv_b),
                        np.asarray(bn_gamma), np.asarray(bn_beta),
                        np.asarray(bn_mean), np.asarray(bn_var))

    assert out.shape == (N, Cout, 4 * H, 4 * W), out.shape
    np.testing.assert_allclose(np.asarray(out), ref, rtol=1e-4, atol=1e-4)
    print("KERNEL_OK")
</pallas_src>

<mosaic_0001>
module attributes {stable_mosaic.version = 11 : i64} {
  func.func @_dfi_kernel(%arg0: i32, %arg1: memref<1x16x64xf32, #tpu.memory_space<vmem>>, %arg2: memref<64x256xf32, #tpu.memory_space<vmem>>, %arg3: memref<64x16xf32, #tpu.memory_space<vmem>>, %arg4: memref<256x512xf32, #tpu.memory_space<vmem>>, %arg5: memref<1x512xf32, #tpu.memory_space<vmem>>, %arg6: memref<1x64x512xf32, #tpu.memory_space<vmem>>) attributes {dimension_semantics = [#tpu.dimension_semantics<parallel>], iteration_bounds = array<i64: 2>, scalar_prefetch = 0 : i64, scratch_operands = 0 : i64, tpu.core_type = #tpu.core_type<tc>, window_params = [{transform_indices = @transform_0, window_bounds = array<i64: 1, 16, 64>}, {pipeline_mode = #tpu.pipeline_mode<synchronous>, transform_indices = @transform_1, window_bounds = array<i64: 64, 256>}, {pipeline_mode = #tpu.pipeline_mode<synchronous>, transform_indices = @transform_2, window_bounds = array<i64: 64, 16>}, {pipeline_mode = #tpu.pipeline_mode<synchronous>, transform_indices = @transform_3, window_bounds = array<i64: 256, 512>}, {pipeline_mode = #tpu.pipeline_mode<synchronous>, transform_indices = @transform_4, window_bounds = array<i64: 1, 512>}, {transform_indices = @transform_5, window_bounds = array<i64: 1, 64, 512>}]} {
    %c0 = arith.constant 0 : index
    %c0_0 = arith.constant 0 : index
    %c0_1 = arith.constant 0 : index
    %0 = vector.load %arg1[%c0, %c0_0, %c0_1] : memref<1x16x64xf32, #tpu.memory_space<vmem>>, vector<1x16x64xf32>
    %1 = vector.shape_cast %0 : vector<1x16x64xf32> to vector<16x64xf32>
    %c0_2 = arith.constant 0 : index
    %c0_3 = arith.constant 0 : index
    %2 = vector.load %arg2[%c0_2, %c0_3] : memref<64x256xf32, #tpu.memory_space<vmem>>, vector<64x256xf32>
    %cst = arith.constant dense<0.000000e+00> : vector<16x256xf32>
    %3 = tpu.matmul %1, %2, %cst {dimension_numbers = #tpu.dot_dimension_numbers<[1], [0], [0], [1], [0, 0, 1, 1], [], []>} : vector<16x64xf32>, vector<64x256xf32>, vector<16x256xf32> -> vector<16x256xf32>
    %c0_4 = arith.constant 0 : index
    %c0_5 = arith.constant 0 : index
    %4 = vector.load %arg3[%c0_4, %c0_5] : memref<64x16xf32, #tpu.memory_space<vmem>>, vector<64x16xf32>
    %cst_6 = arith.constant dense<0.000000e+00> : vector<64x256xf32>
    %5 = tpu.matmul %4, %3, %cst_6 {dimension_numbers = #tpu.dot_dimension_numbers<[1], [0], [0], [1], [0, 0, 1, 1], [], []>} : vector<64x16xf32>, vector<16x256xf32>, vector<64x256xf32> -> vector<64x256xf32>
    %cst_7 = arith.constant 0.000000e+00 : f32
    %6 = vector.broadcast %cst_7 : f32 to vector<64x256xf32>
    %7 = arith.maximumf %5, %6 : vector<64x256xf32>
    %c0_8 = arith.constant 0 : index
    %c0_9 = arith.constant 0 : index
    %8 = vector.load %arg4[%c0_8, %c0_9] : memref<256x512xf32, #tpu.memory_space<vmem>>, vector<256x512xf32>
    %cst_10 = arith.constant dense<0.000000e+00> : vector<64x512xf32>
    %9 = tpu.matmul %7, %8, %cst_10 {dimension_numbers = #tpu.dot_dimension_numbers<[1], [0], [0], [1], [0, 0, 1, 1], [], []>} : vector<64x256xf32>, vector<256x512xf32>, vector<64x512xf32> -> vector<64x512xf32>
    %c0_11 = arith.constant 0 : index
    %c0_12 = arith.constant 0 : index
    %10 = vector.load %arg5[%c0_11, %c0_12] : memref<1x512xf32, #tpu.memory_space<vmem>>, vector<1x512xf32>
    %11 = vector.broadcast %10 : vector<1x512xf32> to vector<64x512xf32>
    %12 = arith.addf %9, %11 : vector<64x512xf32>
    %c0_13 = arith.constant 0 : index
    %c0_14 = arith.constant 0 : index
    %c0_15 = arith.constant 0 : index
    %13 = vector.load %arg6[%c0_13, %c0_14, %c0_15] : memref<1x64x512xf32, #tpu.memory_space<vmem>>, vector<1x64x512xf32>
    %14 = vector.shape_cast %13 : vector<1x64x512xf32> to vector<64x512xf32>
    %15 = vector.shape_cast %12 : vector<64x512xf32> to vector<1x64x512xf32>
    tpu.vector_store %arg6[%c0_13, %c0_14, %c0_15], %15 {strides = array<i32>} : memref<1x64x512xf32, #tpu.memory_space<vmem>>, vector<1x64x512xf32>,
    return
  }
  func.func @transform_0(%arg0: i32) -> (i32, i32, i32) {
    %c0_i32 = arith.constant 0 : i32
    %c0_i32_0 = arith.constant 0 : i32
    %c0_i32_1 = arith.constant 0 : i32
    return %arg0, %c0_i32, %c0_i32_0 : i32, i32, i32
  }
  func.func @transform_1(%arg0: i32) -> (i32, i32) {
    %c0_i32 = arith.constant 0 : i32
    %c0_i32_0 = arith.constant 0 : i32
    %c0_i32_1 = arith.constant 0 : i32
    return %c0_i32, %c0_i32_0 : i32, i32
  }
  func.func @transform_2(%arg0: i32) -> (i32, i32) {
    %c0_i32 = arith.constant 0 : i32
    %c0_i32_0 = arith.constant 0 : i32
    %c0_i32_1 = arith.constant 0 : i32
    return %c0_i32, %c0_i32_0 : i32, i32
  }
  func.func @transform_3(%arg0: i32) -> (i32, i32) {
    %c0_i32 = arith.constant 0 : i32
    %c0_i32_0 = arith.constant 0 : i32
    %c0_i32_1 = arith.constant 0 : i32
    return %c0_i32, %c0_i32_0 : i32, i32
  }
  func.func @transform_4(%arg0: i32) -> (i32, i32) {
    %c0_i32 = arith.constant 0 : i32
    %c0_i32_0 = arith.constant 0 : i32
    %c0_i32_1 = arith.constant 0 : i32
    return %c0_i32, %c0_i32_0 : i32, i32
  }
  func.func @transform_5(%arg0: i32) -> (i32, i32, i32) {
    %c0_i32 = arith.constant 0 : i32
    %c0_i32_0 = arith.constant 0 : i32
    %c0_i32_1 = arith.constant 0 : i32
    return %arg0, %c0_i32, %c0_i32_0 : i32, i32, i32
  }
}

</mosaic_0001>

<bundles_post_ra>
// kernel: _dfi_forward.1
= control target key start
LH: loop header
LB: loop body
LE: loop exit
PB: predicated region body
PF: predicated region fallthrough
CT: control target
= control target key end

     0   :  { %s1171_s18 = smov 0   ;;  %s1747_s0 = inlined_call_operand.vmem [shape: f32[2,16,64], index: 0, kind: input, shape index: {}]   ;;  %s1748_s1 = inlined_call_operand.vmem [shape: f32[64,256], index: 1, kind: input, shape index: {}]   ;;  %s1749_s2 = inlined_call_operand.vmem [shape: f32[64,16], index: 2, kind: input, shape index: {}]   ;;  %s1750_s3 = inlined_call_operand.vmem [shape: f32[256,512], index: 3, kind: input, shape index: {}]   ;;  %s1751_s4 = inlined_call_operand.vmem [shape: f32[1,512], index: 4, kind: input, shape index: {}]   ;;  %s1752_s5 = inlined_call_operand.vmem [shape: f32[2,64,512], index: 5, kind: output, shape index: {}]  }
   0x1 LB: > { %s952_s19 = sadd.s32 4294967295, %s1138_s18   ;;  %p956_p0 = scmp.ge.s32.totalorder %s1138_s18, 1  ;;  %s1138_s18 = sphi %s1171_s18, %s15_s18  }
   0x2   : > { %p187_p1 = scmp.lt.s32.totalorder %s1138_s18, 3 }
   0x4   : > { %p188_p2 = pnand %p956_p0, %p187_p1 }
   0x5   : > { %v228_v0 = vld [vmem:[%s1748_s1 + $0x8] sm:$0xff] (!%p188_p2)  ;;  %v230_v1 = vld [vmem:[%s1748_s1 + $0x18] sm:$0xff] (!%p188_p2)  ;;  %v227_v2 = vld [vmem:[%s1748_s1] sm:$0xff] (!%p188_p2)  ;;  %v1140_v7 = vmov (!%p188_p2), 0.0   ;;  %p215_p3 = scmp.lt.s32.totalorder (!%p188_p2), %s952_s19, 1  ;;  %vm243_vm0 = vcmask (!%p188_p2), 523264  }
   0x6   : > { %191 = sbr.rel (%p188_p2) target bundleno = 707 (0x2c3), region = 40  ;;  %v975_v3 = vpack.c.bf16 (!%p188_p2), %v230_v1, %v228_v0  ;;  %v229_v4 = vld [vmem:[%s1748_s1 + $0x10] sm:$0xff] (!%p188_p2)  ;;  %v232_v5 = vld [vmem:[%s1748_s1 + $0x28] sm:$0xff] (!%p188_p2)  ;;  %v234_v6 = vld [vmem:[%s1748_s1 + $0x38] sm:$0xff] (!%p188_p2)  ;;  %314 = vmatprep.mubr.f32.mxu0 (!%p188_p2), %v1140_v7  ;;  %424 = vmatprep.mubr.f32.mxu1 (!%p188_p2), %v1140_v7  ;;  %vm335_vm1 = vcmask (!%p188_p2), 130048  }
   0x7   : > { %v977_v8 = vpack.c.bf16 (!%p188_p2), %v229_v4, %v227_v2  ;;  %v979_v9 = vpack.c.bf16 (!%p188_p2), %v234_v6, %v232_v5  ;;  %v231_v10 = vld [vmem:[%s1748_s1 + $0x20] sm:$0xff] (!%p188_p2)  ;;  %v233_v11 = vld [vmem:[%s1748_s1 + $0x30] sm:$0xff] (!%p188_p2)  ;;  %v236_v12 = vld [vmem:[%s1748_s1 + $0x48] sm:$0xff] (!%p188_p2) }
   0x8   : > { %976 = vmatprep.subr.bf16.mxu0 (!%p188_p2), %v975_v3  ;;  %v238_v13 = vld [vmem:[%s1748_s1 + $0x58] sm:$0xff] (!%p188_p2)  ;;  %v981_v14 = vpack.c.bf16 (!%p188_p2), %v233_v11, %v231_v10  ;;  %v235_v16 = vld [vmem:[%s1748_s1 + $0x40] sm:$0xff] (!%p188_p2)  ;;  %v237_v17 = vld [vmem:[%s1748_s1 + $0x50] sm:$0xff] (!%p188_p2) }
   0x9   : > { %978 = vmatpush1.bf16.msra.mxu0 (!%p188_p2), %v977_v8  ;;  %v983_v15 = vpack.c.bf16 (!%p188_p2), %v238_v13, %v236_v12  ;;  %v240_v18 = vld [vmem:[%s1748_s1 + $0x68] sm:$0xff] (!%p188_p2)  ;;  %v242_v19 = vld [vmem:[%s1748_s1 + $0x78] sm:$0xff] (!%p188_p2)  ;;  %v985_v20 = vpack.c.bf16 (!%p188_p2), %v237_v17, %v235_v16  ;;  %v239_v22 = vld [vmem:[%s1748_s1 + $0x60] sm:$0xff] (!%p188_p2) }
   0xa   : > { %980 = vmatprep.subr.bf16.mxu0 (!%p188_p2), %v979_v9  ;;  %v987_v21 = vpack.c.bf16 (!%p188_p2), %v242_v19, %v240_v18  ;;  %v241_v23 = vld [vmem:[%s1748_s1 + $0x70] sm:$0xff] (!%p188_p2)  ;;  %v492_v27 = vld [vmem:[%s1750_s3 + $0x18] sm:$0xff] (!%p188_p2) }
   0xb   : > { %v989_v24 = vpack.c.bf16 (!%p188_p2), %v241_v23, %v239_v22  ;;  %v496_v28 = vld [vmem:[%s1750_s3 + $0x38] sm:$0xff] (!%p188_p2)  ;;  %v491_v30 = vld [vmem:[%s1750_s3 + $0x10] sm:$0xff] (!%p188_p2) }
   0xc   : > { %v1059_v29 = vpack.c.bf16 (!%p188_p2), %v496_v28, %v492_v27  ;;  %v495_v31 = vld [vmem:[%s1750_s3 + $0x30] sm:$0xff] (!%p188_p2)  ;;  %v500_v33 = vld [vmem:[%s1750_s3 + $0x58] sm:$0xff] (!%p188_p2) }
   0xd   : > { %s1754_s19 = smov (!%p215_p3, %s952_s19), 1  ;;  %982 = vmatpush1.bf16.msra.mxu0 %v981_v14  ;;  %v1061_v32 = vpack.c.bf16 %v495_v31, %v491_v30  ;;  %v504_v34 = vld [vmem:[%s1750_s3 + $0x78] sm:$0xff]  ;;  %v499_v36 = vld [vmem:[%s1750_s3 + $0x50] sm:$0xff] }
   0xe   : > { %984 = vmatprep.subr.bf16.mxu0 %v983_v15  ;;  %s973_s29 = sshll.u32 %s1754_s19, 4  ;;  %v1063_v35 = vpack.c.bf16 %v504_v34, %v500_v33  ;;  %v503_v37 = vld [vmem:[%s1750_s3 + $0x70] sm:$0xff]  ;;  %v508_v39 = vld [vmem:[%s1750_s3 + $0x98] sm:$0xff]  ;;  %s974_s6 = sshll.u32 %s1754_s19, 8 }
   0xf   : > { %s219_s7 = scalar_lea.vmem %s1747_s0, %s973_s29  ;;  %v1065_v38 = vpack.c.bf16 %v503_v37, %v499_v36  ;;  %v512_v40 = vld [vmem:[%s1750_s3 + $0xb8] sm:$0xff]  ;;  %v507_v42 = vld [vmem:[%s1750_s3 + $0x90] sm:$0xff]  ;;  %s1678_s9 = scalar_lea.vmem %s1752_s5, %s974_s6 }
  0x10   : > { %v225_v25 = vld [vmem:[%s219_s7] sm:$0xff]  ;;  %v226_v26 = vld [vmem:[%s219_s7 + $0x8] sm:$0xff]  ;;  %v1067_v41 = vpack.c.bf16 %v512_v40, %v508_v39  ;;  %v511_v43 = vld [vmem:[%s1750_s3 + $0xb0] sm:$0xff] }
  0x11   : > { %986 = vmatpush1.bf16.msra.mxu0 %v985_v20  ;;  %v516_v44 = vld [vmem:[%s1750_s3 + $0xd8] sm:$0xff]  ;;  %v1069_v45 = vpack.c.bf16 %v511_v43, %v507_v42  ;;  %v515_v48 = vld [vmem:[%s1750_s3 + $0xd0] sm:$0xff] }
  0x12   : > { %988 = vmatprep.subr.bf16.mxu0 %v987_v21  ;;  %v520_v46 = vld [vmem:[%s1750_s3 + $0xf8] sm:$0xff]  ;;  %v519_v49 = vld [vmem:[%s1750_s3 + $0xf0] sm:$0xff] }
  0x13   : > { %v1071_v47 = vpack.c.bf16 %v520_v46, %v516_v44  ;;  %v524_v50 = vld [vmem:[%s1750_s3 + $0x118] sm:$0xff]  ;;  %v1073_v52 = vpack.c.bf16 %v519_v49, %v515_v48  ;;  %v523_v54 = vld [vmem:[%s1750_s3 + $0x110] sm:$0xff] }
  0x14   : > { %v528_v51 = vld [vmem:[%s1750_s3 + $0x138] sm:$0xff]  ;;  %v527_v55 = vld [vmem:[%s1750_s3 + $0x130] sm:$0xff] }
  0x15   : > { %990 = vmatpush1.bf16.msra.mxu0 %v989_v24  ;;  %v1075_v53 = vpack.c.bf16 %v528_v51, %v524_v50  ;;  %v532_v56 = vld [vmem:[%s1750_s3 + $0x158] sm:$0xff]  ;;  %v1077_v58 = vpack.c.bf16 %v527_v55, %v523_v54  ;;  %v531_v60 = vld [vmem:[%s1750_s3 + $0x150] sm:$0xff] }
  0x16   : > { %1060 = vmatprep.subr.bf16.mxu0 %v1059_v29  ;;  %v536_v57 = vld [vmem:[%s1750_s3 + $0x178] sm:$0xff]  ;;  %v535_v61 = vld [vmem:[%s1750_s3 + $0x170] sm:$0xff] }
  0x17   : > { %v1079_v59 = vpack.c.bf16 %v536_v57, %v532_v56  ;;  %v540_v62 = vld [vmem:[%s1750_s3 + $0x198] sm:$0xff]  ;;  %v1081_v0 = vpack.c.bf16 %v535_v61, %v531_v60  ;;  %v539_v2 = vld [vmem:[%s1750_s3 + $0x190] sm:$0xff]  ;;  %v490_v56 = vld [vmem:[%s1750_s3 + $0x8] sm:$0xff] }
  0x18   : > { %961 = vmatmul.mubr.msk.f32.vlgmr.msra.gmra.mrb[0].mxu0 %vm243_vm0, %v225_v25  ;;  %v544_v63 = vld [vmem:[%s1750_s3 + $0x1b8] sm:$0xff]  ;;  %v543_v3 = vld [vmem:[%s1750_s3 + $0x1b0] sm:$0xff]  ;;  %v494_v57 = vld [vmem:[%s1750_s3 + $0x28] sm:$0xff] }
  0x19   : > { %320 = vmatprep.mubr.f32.mxu0 %v1140_v7  ;;  %1062 = vmatpush1.bf16.msra.mxu0 %v1061_v32  ;;  %v1083_v1 = vpack.c.bf16 %v544_v63, %v540_v62  ;;  %v548_v4 = vld [vmem:[%s1750_s3 + $0x1d8] sm:$0xff]  ;;  %v1085_v6 = vpack.c.bf16 %v543_v3, %v539_v2  ;;  %v547_v9 = vld [vmem:[%s1750_s3 + $0x1d0] sm:$0xff]  ;;  %v995_v62 = vpack.c.bf16 %v494_v57, %v490_v56  ;;  %v489_v63 = vld [vmem:[%s1750_s3] sm:$0xff] }
  0x1a   : > { %1064 = vmatprep.subr.bf16.mxu0 %v1063_v35  ;;  %v552_v5 = vld [vmem:[%s1750_s3 + $0x1f8] sm:$0xff]  ;;  %v551_v10 = vld [vmem:[%s1750_s3 + $0x1f0] sm:$0xff]  ;;  %v502_v2 = vld [vmem:[%s1750_s3 + $0x68] sm:$0xff] }
  0x1b   : > { %v1087_v8 = vpack.c.bf16 %v552_v5, %v548_v4  ;;  %v556_v11 = vld [vmem:[%s1750_s3 + $0x218] sm:$0xff]  ;;  %v1089_v13 = vpack.c.bf16 %v551_v10, %v547_v9  ;;  %v555_v15 = vld [vmem:[%s1750_s3 + $0x210] sm:$0xff]  ;;  %v327_v3 = vld [vmem:[%s1749_s2] sm:$0xff] }
  0x1c   : > { %962 = vmatmul.mubr.msk.f32.gmra.mrb[2].mxu0 %vm243_vm0, %v226_v26  ;;  %v560_v12 = vld [vmem:[%s1750_s3 + $0x238] sm:$0xff]  ;;  %v559_v16 = vld [vmem:[%s1750_s3 + $0x230] sm:$0xff]  ;;  %v506_v9 = vld [vmem:[%s1750_s3 + $0x88] sm:$0xff] }
  0x1d   : > { %1066 = vmatpush1.bf16.msra.mxu0 %v1065_v38  ;;  %v1091_v14 = vpack.c.bf16 %v560_v12, %v556_v11  ;;  %v564_v17 = vld [vmem:[%s1750_s3 + $0x258] sm:$0xff]  ;;  %v1093_v19 = vpack.c.bf16 %v559_v16, %v555_v15  ;;  %v563_v21 = vld [vmem:[%s1750_s3 + $0x250] sm:$0xff]  ;;  %v510_v10 = vld [vmem:[%s1750_s3 + $0xa8] sm:$0xff] }
  0x1e   : > { %1068 = vmatprep.subr.bf16.mxu0 %v1067_v41  ;;  %v568_v18 = vld [vmem:[%s1750_s3 + $0x278] sm:$0xff]  ;;  %v567_v22 = vld [vmem:[%s1750_s3 + $0x270] sm:$0xff]  ;;  %v328_v11 = vld [vmem:[%s1749_s2 + $0x8] sm:$0xff] }
  0x1f   : > { %v1095_v20 = vpack.c.bf16 %v568_v18, %v564_v17  ;;  %v572_v23 = vld [vmem:[%s1750_s3 + $0x298] sm:$0xff]  ;;  %v1097_v25 = vpack.c.bf16 %v567_v22, %v563_v21  ;;  %v571_v27 = vld [vmem:[%s1750_s3 + $0x290] sm:$0xff]  ;;  %v509_v15 = vld [vmem:[%s1750_s3 + $0xa0] sm:$0xff] }
  0x20   : > { %v576_v24 = vld [vmem:[%s1750_s3 + $0x2b8] sm:$0xff]  ;;  %v575_v28 = vld [vmem:[%s1750_s3 + $0x2b0] sm:$0xff]  ;;  %v514_v16 = vld [vmem:[%s1750_s3 + $0xc8] sm:$0xff] }
  0x21   : > { %1070 = vmatpush1.bf16.msra.mxu0 %v1069_v45  ;;  %v1099_v26 = vpack.c.bf16 %v576_v24, %v572_v23  ;;  %v580_v29 = vld [vmem:[%s1750_s3 + $0x2d8] sm:$0xff]  ;;  %v1101_v31 = vpack.c.bf16 %v575_v28, %v571_v27  ;;  %v579_v33 = vld [vmem:[%s1750_s3 + $0x2d0] sm:$0xff]  ;;  %v518_v17 = vld [vmem:[%s1750_s3 + $0xe8] sm:$0xff] }
  0x22   : > { %1072 = vmatprep.subr.bf16.mxu0 %v1071_v47  ;;  %v584_v30 = vld [vmem:[%s1750_s3 + $0x2f8] sm:$0xff]  ;;  %v583_v34 = vld [vmem:[%s1750_s3 + $0x2f0] sm:$0xff]  ;;  %v513_v21 = vld [vmem:[%s1750_s3 + $0xc0] sm:$0xff] }
  0x23   : > { %v1103_v32 = vpack.c.bf16 %v584_v30, %v580_v29  ;;  %v588_v35 = vld [vmem:[%s1750_s3 + $0x318] sm:$0xff]  ;;  %v1105_v37 = vpack.c.bf16 %v583_v34, %v579_v33  ;;  %v587_v39 = vld [vmem:[%s1750_s3 + $0x310] sm:$0xff]  ;;  %v517_v22 = vld [vmem:[%s1750_s3 + $0xe0] sm:$0xff] }
  0x24   : > { %v592_v36 = vld [vmem:[%s1750_s3 + $0x338] sm:$0xff]  ;;  %v591_v40 = vld [vmem:[%s1750_s3 + $0x330] sm:$0xff]  ;;  %v522_v23 = vld [vmem:[%s1750_s3 + $0x108] sm:$0xff] }
  0x25   : > { %1074 = vmatpush1.bf16.msra.mxu0 %v1073_v52  ;;  %v1107_v38 = vpack.c.bf16 %v592_v36, %v588_v35  ;;  %v596_v41 = vld [vmem:[%s1750_s3 + $0x358] sm:$0xff]  ;;  %v1109_v43 = vpack.c.bf16 %v591_v40, %v587_v39  ;;  %v595_v45 = vld [vmem:[%s1750_s3 + $0x350] sm:$0xff]  ;;  %v526_v24 = vld [vmem:[%s1750_s3 + $0x128] sm:$0xff] }
  0x26   : > { %1076 = vmatprep.subr.bf16.mxu0 %v1075_v53  ;;  %v600_v42 = vld [vmem:[%s1750_s3 + $0x378] sm:$0xff]  ;;  %v599_v46 = vld [vmem:[%s1750_s3 + $0x370] sm:$0xff]  ;;  %v1011_v27 = vpack.c.bf16 %v526_v24, %v522_v23  ;;  %v521_v28 = vld [vmem:[%s1750_s3 + $0x100] sm:$0xff] }
  0x27   : > { %v1111_v44 = vpack.c.bf16 %v600_v42, %v596_v41  ;;  %v604_v47 = vld [vmem:[%s1750_s3 + $0x398] sm:$0xff]  ;;  %v1113_v49 = vpack.c.bf16 %v599_v46, %v595_v45  ;;  %v603_v51 = vld [vmem:[%s1750_s3 + $0x390] sm:$0xff]  ;;  %v525_v29 = vld [vmem:[%s1750_s3 + $0x120] sm:$0xff] }
  0x28   : > { %v608_v48 = vld [vmem:[%s1750_s3 + $0x3b8] sm:$0xff]  ;;  %v607_v52 = vld [vmem:[%s1750_s3 + $0x3b0] sm:$0xff]  ;;  %v530_v30 = vld [vmem:[%s1750_s3 + $0x148] sm:$0xff]  ;;  %v1013_v33 = vpack.c.bf16 %v525_v29, %v521_v28 }
  0x29   : > { %1078 = vmatpush1.bf16.msra.mxu0 %v1077_v58  ;;  %v1115_v50 = vpack.c.bf16 %v608_v48, %v604_v47  ;;  %v1117_v53 = vpack.c.bf16 %v607_v52, %v603_v51  ;;  %v329_v18 = vld [vmem:[%s1749_s2 + $0x10] sm:$0xff]  ;;  %v529_v35 = vld [vmem:[%s1750_s3 + $0x140] sm:$0xff]  ;;  %v332_v39 = vld [vmem:[%s1749_s2 + $0x28] sm:$0xff] }
  0x2a   : > { %1080 = vmatprep.subr.bf16.mxu0 %v1079_v59  ;;  %v533_v36 = vld [vmem:[%s1750_s3 + $0x160] sm:$0xff]  ;;  %v550_v45 = vld [vmem:[%s1750_s3 + $0x1e8] sm:$0xff]  ;;  %v333_v46 = vld [vmem:[%s1749_s2 + $0x30] sm:$0xff] }
  0x2b   : > { %v1017_v40 = vpack.c.bf16 %v533_v36, %v529_v35  ;;  %v537_v42 = vld [vmem:[%s1750_s3 + $0x180] sm:$0xff]  ;;  %v554_v51 = vld [vmem:[%s1750_s3 + $0x208] sm:$0xff]  ;;  %v616_v35 = vld [vmem:[%s1750_s3 + $0x3f8] sm:$0xff] }
  0x2c   : > { %v558_v52 = vld [vmem:[%s1750_s3 + $0x228] sm:$0xff]  ;;  %v553_v56 = vld [vmem:[%s1750_s3 + $0x200] sm:$0xff] }
  0x2d   : > { %1082 = vmatpush1.bf16.msra.mxu0 %v1081_v0  ;;  %v493_v0 = vld [vmem:[%s1750_s3 + $0x20] sm:$0xff]  ;;  %v602_v24 = vld [vmem:[%s1750_s3 + $0x388] sm:$0xff] }
  0x2e   : > { %1084 = vmatprep.subr.bf16.mxu0 %v1083_v1  ;;  %v498_v1 = vld [vmem:[%s1750_s3 + $0x48] sm:$0xff]  ;;  %v997_v4 = vpack.c.bf16 %v493_v0, %v489_v63  ;;  %v557_v57 = vld [vmem:[%s1750_s3 + $0x220] sm:$0xff] }
  0x2f   : > { %v999_v5 = vpack.c.bf16 %v502_v2, %v498_v1  ;;  %v570_v63 = vld [vmem:[%s1750_s3 + $0x288] sm:$0xff]  ;;  %v597_v23 = vld [vmem:[%s1750_s3 + $0x360] sm:$0xff] }
  0x30   : > { %v574_v0 = vld [vmem:[%s1750_s3 + $0x2a8] sm:$0xff]  ;;  %v601_v28 = vld [vmem:[%s1750_s3 + $0x380] sm:$0xff] }
  0x31   : > { %1086 = vmatpush1.bf16.msra.mxu0 %v1085_v6  ;;  %v497_v6 = vld [vmem:[%s1750_s3 + $0x40] sm:$0xff]  ;;  %v1035_v2 = vpack.c.bf16 %v574_v0, %v570_v63 }
  0x32   : > { %1088 = vmatprep.subr.bf16.mxu0 %v1087_v8  ;;  %v501_v8 = vld [vmem:[%s1750_s3 + $0x60] sm:$0xff] }
  0x33   : > { %v1001_v12 = vpack.c.bf16 %v501_v8, %v497_v6  ;;  %v582_v6 = vld [vmem:[%s1750_s3 + $0x2e8] sm:$0xff]  ;;  %v605_v29 = vld [vmem:[%s1750_s3 + $0x3a0] sm:$0xff] }
  0x34   : > { %v609_v36 = vld [vmem:[%s1750_s3 + $0x3c0] sm:$0xff] }
  0x35   : > { %1090 = vmatpush1.bf16.msra.mxu0 %v1089_v13  ;;  %v1003_v13 = vpack.c.bf16 %v510_v10, %v506_v9  ;;  %v577_v10 = vld [vmem:[%s1750_s3 + $0x2c0] sm:$0xff] }
  0x36   : > { %1092 = vmatprep.subr.bf16.mxu0 %v1091_v14  ;;  %v505_v14 = vld [vmem:[%s1750_s3 + $0x80] sm:$0xff] }
  0x39   : > { %1094 = vmatpush1.bf16.msra.mxu0 %v1093_v19  ;;  %v1005_v19 = vpack.c.bf16 %v509_v15, %v505_v14 }
  0x3a   : > { %1096 = vmatprep.subr.bf16.mxu0 %v1095_v20  ;;  %v1007_v20 = vpack.c.bf16 %v518_v17, %v514_v16  ;;  %v585_v16 = vld [vmem:[%s1750_s3 + $0x300] sm:$0xff] }
  0x3b   : > { %v589_v17 = vld [vmem:[%s1750_s3 + $0x320] sm:$0xff] }
  0x3d   : > { %1098 = vmatpush1.bf16.msra.mxu0 %v1097_v25  ;;  %v330_v25 = vld [vmem:[%s1749_s2 + $0x18] sm:$0xff] }
  0x3e   : > { %1100 = vmatprep.subr.bf16.mxu0 %v1099_v26  ;;  %v1009_v26 = vpack.c.bf16 %v517_v22, %v513_v21  ;;  %v593_v22 = vld [vmem:[%s1750_s3 + $0x340] sm:$0xff] }
  0x41   : > { %1102 = vmatpush1.bf16.msra.mxu0 %v1101_v31  ;;  %v534_v31 = vld [vmem:[%s1750_s3 + $0x168] sm:$0xff] }
  0x42   : > { %1104 = vmatprep.subr.bf16.mxu0 %v1103_v32  ;;  %v331_v32 = vld [vmem:[%s1749_s2 + $0x20] sm:$0xff]  ;;  %v1015_v34 = vpack.c.bf16 %v534_v31, %v530_v30  ;;  %v1053_v30 = vpack.c.bf16 %v605_v29, %v601_v28  ;;  %v610_v31 = vld [vmem:[%s1750_s3 + $0x3c8] sm:$0xff] }
  0x45   : > { %1106 = vmatpush1.bf16.msra.mxu0 %v1105_v37  ;;  %v538_v37 = vld [vmem:[%s1750_s3 + $0x188] sm:$0xff] }
  0x46   : > { %1108 = vmatprep.subr.bf16.mxu0 %v1107_v38  ;;  %v542_v38 = vld [vmem:[%s1750_s3 + $0x1a8] sm:$0xff] }
  0x47   : > { %v1019_v41 = vpack.c.bf16 %v542_v38, %v538_v37  ;;  %v613_v37 = vld [vmem:[%s1750_s3 + $0x3e0] sm:$0xff] }
  0x49   : > { %1110 = vmatpush1.bf16.msra.mxu0 %v1109_v43  ;;  %v541_v43 = vld [vmem:[%s1750_s3 + $0x1a0] sm:$0xff] }
  0x4a   : > { %1112 = vmatprep.subr.bf16.mxu0 %v1111_v44  ;;  %v546_v44 = vld [vmem:[%s1750_s3 + $0x1c8] sm:$0xff]  ;;  %v1021_v47 = vpack.c.bf16 %v541_v43, %v537_v42 }
  0x4b   : > { %v1023_v48 = vpack.c.bf16 %v550_v45, %v546_v44 }
  0x4d   : > { %1114 = vmatpush1.bf16.msra.mxu0 %v1113_v49  ;;  %v545_v49 = vld [vmem:[%s1750_s3 + $0x1c0] sm:$0xff] }
  0x4e   : > { %1116 = vmatprep.subr.bf16.mxu0 %v1115_v50  ;;  %v549_v50 = vld [vmem:[%s1750_s3 + $0x1e0] sm:$0xff] }
  0x51   : > { %1118 = vmatpush1.bf16.msra.mxu0 %v1117_v53  ;;  %v334_v53 = vld [vmem:[%s1749_s2 + $0x38] sm:$0xff] }
  0xeb   : > { %v316_v54 = vpop.f32.mrb[0].mxu0 }
  0xec   : > { %v318_v55 = vpop.f32.mrb[1].mxu0 }
  0xef   : > { %v322_v58 = vpop.f32.mrb[2].mxu0 }
  0xf0   : > { %v993_v59 = vpack.c.bf16 %v322_v58, %v316_v54  ;;  %v324_v60 = vpop.f32.mrb[3].mxu0  ;;  %v1025_v54 = vpack.c.bf16 %v549_v50, %v545_v49  ;;  %v566_v58 = vld [vmem:[%s1750_s3 + $0x268] sm:$0xff] }
  0xf1   : > { %v991_v61 = vpack.c.bf16 %v324_v60, %v318_v55  ;;  %v1027_v55 = vpack.c.bf16 %v558_v52, %v554_v51 }
  0xf3   : > { %992 = vmatprep.subr.bf16.mxu1 %v991_v61  ;;  %v561_v61 = vld [vmem:[%s1750_s3 + $0x240] sm:$0xff] }
  0xf4   : > { %994 = vmatpush1.bf16.msra.mxu1 %v993_v59  ;;  %v1029_v59 = vpack.c.bf16 %v557_v57, %v553_v56 }
  0xf5   : > { %996 = vmatprep.subr.bf16.mxu1 %v995_v62  ;;  %v565_v62 = vld [vmem:[%s1750_s3 + $0x260] sm:$0xff] }
  0xf6   : > { %v1033_v1 = vpack.c.bf16 %v565_v62, %v561_v61 }
  0xf7   : > { %963 = vmatmul.mubr.msk.f32.vlgmr.msra.gmra.mrb[0].mxu1 %vm335_vm1, %v327_v3  ;;  %v569_v3 = vld [vmem:[%s1750_s3 + $0x280] sm:$0xff] }
  0xf8   : > { %430 = vmatprep.mubr.f32.mxu1 %v1140_v7  ;;  %998 = vmatpush1.bf16.msra.mxu1 %v997_v4  ;;  %v573_v4 = vld [vmem:[%s1750_s3 + $0x2a0] sm:$0xff] }
  0xf9   : > { %1000 = vmatprep.subr.bf16.mxu1 %v999_v5  ;;  %v578_v5 = vld [vmem:[%s1750_s3 + $0x2c8] sm:$0xff]  ;;  %v1037_v8 = vpack.c.bf16 %v573_v4, %v569_v3 }
  0xfa   : > { %v1039_v9 = vpack.c.bf16 %v582_v6, %v578_v5 }
  0xfb   : > { %964 = vmatmul.mubr.msk.f32.gmra.mrb[2].mxu1 %vm335_vm1, %v328_v11  ;;  %v581_v11 = vld [vmem:[%s1750_s3 + $0x2e0] sm:$0xff] }
  0xfc   : > { %436 = vmatprep.mubr.f32.mxu1 %v1140_v7  ;;  %1002 = vmatpush1.bf16.msra.mxu1 %v1001_v12  ;;  %v586_v12 = vld [vmem:[%s1750_s3 + $0x308] sm:$0xff]  ;;  %v1041_v14 = vpack.c.bf16 %v581_v11, %v577_v10  ;;  %v619_v11 = vlaneseq }
  0xfd   : > { %1004 = vmatprep.subr.bf16.mxu1 %v1003_v13  ;;  %v590_v13 = vld [vmem:[%s1750_s3 + $0x328] sm:$0xff] }
  0xfe   : > { %v1043_v15 = vpack.c.bf16 %v590_v13, %v586_v12  ;;  %v620_v12 = vshrl.u32 %v619_v11, 7 }
  0xff   : > { %965 = vmatmul.mubr.msk.f32.gmra.mrb[4].mxu1 %vm335_vm1, %v329_v18  ;;  %v594_v18 = vld [vmem:[%s1750_s3 + $0x348] sm:$0xff] }
 0x100   : > { %442 = vmatprep.mubr.f32.mxu1 %v1140_v7  ;;  %1006 = vmatpush1.bf16.msra.mxu1 %v1005_v19  ;;  %v598_v19 = vld [vmem:[%s1750_s3 + $0x368] sm:$0xff]  ;;  %v621_v13 = vsub.s32 0, %v620_v12 }
 0x101   : > { %1008 = vmatprep.subr.bf16.mxu1 %v1007_v20  ;;  %v1045_v20 = vpack.c.bf16 %v589_v17, %v585_v16  ;;  %v1047_v21 = vpack.c.bf16 %v598_v19, %v594_v18  ;;  %v625_v16 = vsub.s32 1, %v620_v12  ;;  %v633_v17 = vsub.s32 3, %v620_v12 }
 0x103   : > { %966 = vmatmul.mubr.msk.f32.gmra.mrb[6].mxu1 %vm335_vm1, %v330_v25  ;;  %v606_v25 = vld [vmem:[%s1750_s3 + $0x3a8] sm:$0xff] }
 0x104   : > { %448 = vmatprep.mubr.f32.mxu1 %v1140_v7  ;;  %1010 = vmatpush1.bf16.msra.mxu1 %v1009_v26  ;;  %v1049_v26 = vpack.c.bf16 %v597_v23, %v593_v22 }
 0x105   : > { %1012 = vmatprep.subr.bf16.mxu1 %v1011_v27  ;;  %v1051_v27 = vpack.c.bf16 %v606_v25, %v602_v24 }
 0x107   : > { %967 = vmatmul.mubr.msk.f32.gmra.mrb[8].mxu1 %vm335_vm1, %v331_v32  ;;  %v614_v32 = vld [vmem:[%s1750_s3 + $0x3e8] sm:$0xff] }
 0x108   : > { %454 = vmatprep.mubr.f32.mxu1 %v1140_v7  ;;  %1014 = vmatpush1.bf16.msra.mxu1 %v1013_v33  ;;  %v612_v33 = vld [vmem:[%s1750_s3 + $0x3d8] sm:$0xff] }
 0x109   : > { %1016 = vmatprep.subr.bf16.mxu1 %v1015_v34  ;;  %v1055_v34 = vpack.c.bf16 %v614_v32, %v610_v31  ;;  %v1119_v38 = vpack.c.bf16 %v616_v35, %v612_v33 }
 0x10b   : > { %968 = vmatmul.mubr.msk.f32.gmra.mrb[10].mxu1 %vm335_vm1, %v332_v39  ;;  %v1057_v39 = vpack.c.bf16 %v613_v37, %v609_v36  ;;  %1120 = vmatprep.subr.bf16.mxu0 %v1119_v38 }
 0x10c   : > { %460 = vmatprep.mubr.f32.mxu1 %v1140_v7  ;;  %1018 = vmatpush1.bf16.msra.mxu1 %v1017_v40  ;;  %v611_v40 = vld [vmem:[%s1750_s3 + $0x3d0] sm:$0xff] }
 0x10d   : > { %1020 = vmatprep.subr.bf16.mxu1 %v1019_v41  ;;  %v615_v41 = vld [vmem:[%s1750_s3 + $0x3f0] sm:$0xff] }
 0x10e   : > { %v1121_v42 = vpack.c.bf16 %v615_v41, %v611_v40 }
 0x10f   : > { %969 = vmatmul.mubr.msk.f32.gmra.mrb[12].mxu1 %vm335_vm1, %v333_v46 }
 0x110   : > { %466 = vmatprep.mubr.f32.mxu1 %v1140_v7  ;;  %1022 = vmatpush1.bf16.msra.mxu1 %v1021_v47  ;;  %v562_v7 = vld [vmem:[%s1750_s3 + $0x248] sm:$0xff] }
 0x111   : > { %1024 = vmatprep.subr.bf16.mxu1 %v1023_v48  ;;  %v1031_v60 = vpack.c.bf16 %v566_v58, %v562_v7  ;;  %1122 = vmatpush1.bf16.msra.mxu0 %v1121_v42 }
 0x113   : > { %970 = vmatmul.mubr.msk.f32.gmra.mrb[14].mxu1 %vm335_vm1, %v334_v53 }
 0x114   : > { %1026 = vmatpush1.bf16.msra.mxu1 %v1025_v54 }
 0x115   : > { %1028 = vmatprep.subr.bf16.mxu1 %v1027_v55 }
 0x118   : > { %1030 = vmatpush1.bf16.msra.mxu1 %v1029_v59 }
 0x119   : > { %1032 = vmatprep.subr.bf16.mxu1 %v1031_v60 }
 0x11c   : > { %1034 = vmatpush1.bf16.msra.mxu1 %v1033_v1 }
 0x11d   : > { %1036 = vmatprep.subr.bf16.mxu1 %v1035_v2 }
 0x120   : > { %1038 = vmatpush1.bf16.msra.mxu1 %v1037_v8 }
 0x121   : > { %1040 = vmatprep.subr.bf16.mxu1 %v1039_v9 }
 0x124   : > { %1042 = vmatpush1.bf16.msra.mxu1 %v1041_v14  ;;  %v629_v14 = vsub.s32 2, %v620_v12 }
 0x125   : > { %1044 = vmatprep.subr.bf16.mxu1 %v1043_v15  ;;  %v617_v15 = vld [vmem:[%s1751_s4] sm:$0xf] }
 0x126   : > { %v1667_v18 = vrot.slane %v617_v15, %v621_v13  ;;  %v1669_v19 = vrot.slane %v617_v15, %v629_v14 }
 0x128   : > { %1046 = vmatpush1.bf16.msra.mxu1 %v1045_v20  ;;  %v1671_v20 = vrot.slane %v617_v15, %v625_v16 }
 0x129   : > { %1048 = vmatprep.subr.bf16.mxu1 %v1047_v21  ;;  %v1673_v21 = vrot.slane %v617_v15, %v633_v17 }
 0x12c   : > { %1050 = vmatpush1.bf16.msra.mxu1 %v1049_v26 }
 0x12d   : > { %1052 = vmatprep.subr.bf16.mxu1 %v1051_v27 }
 0x130   : > { %1054 = vmatpush1.bf16.msra.mxu1 %v1053_v30 }
 0x131   : > { %1056 = vmatprep.subr.bf16.mxu1 %v1055_v34 }
 0x134   : > { %1058 = vmatpush1.bf16.msra.mxu1 %v1057_v39 }
 0x1ca   : > { %v426_v43 = vpop.f32.mrb[0].mxu1 }
 0x1cb   : > { %v428_v44 = vpop.f32.mrb[1].mxu1  ;;  %v473_v46 = vmax.f32 %v426_v43, 0.0 }
 0x1cc   : > { %v474_v45 = vmax.f32 %v428_v44, 0.0 }
 0x1ce   : > { %v432_v47 = vpop.f32.mrb[2].mxu1  ;;  %703 = vmatprep.mubr.f32.mxu1 %v474_v45  ;;  %816 = vmatprep.mubr.f32.mxu0 %v474_v45 }
 0x1cf   : > { %v434_v48 = vpop.f32.mrb[3].mxu1  ;;  %704 = vmatmul.mubr.f32.vlgmr.msra.gmra.mrb[16].mxu1 %v473_v46  ;;  %817 = vmatmul.mubr.f32.vlgmr.msra.gmra.mrb[4].mxu0 %v473_v46  ;;  %v475_v50 = vmax.f32 %v432_v47, 0.0 }
 0x1d0   : > { %v476_v49 = vmax.f32 %v434_v48, 0.0 }
 0x1d2   : > { %v438_v51 = vpop.f32.mrb[4].mxu1  ;;  %709 = vmatprep.mubr.f32.mxu1 %v476_v49  ;;  %822 = vmatprep.mubr.f32.mxu0 %v476_v49 }
 0x1d3   : > { %v440_v52 = vpop.f32.mrb[5].mxu1  ;;  %710 = vmatmul.mubr.f32.gmra.mrb[18].mxu1 %v475_v50  ;;  %823 = vmatmul.mubr.f32.gmra.mrb[6].mxu0 %v475_v50  ;;  %v477_v54 = vmax.f32 %v438_v51, 0.0 }
 0x1d4   : > { %v478_v53 = vmax.f32 %v440_v52, 0.0 }
 0x1d6   : > { %v444_v55 = vpop.f32.mrb[6].mxu1  ;;  %715 = vmatprep.mubr.f32.mxu1 %v478_v53  ;;  %828 = vmatprep.mubr.f32.mxu0 %v478_v53 }
 0x1d7   : > { %v446_v56 = vpop.f32.mrb[7].mxu1  ;;  %716 = vmatmul.mubr.f32.gmra.mrb[20].mxu1 %v477_v54  ;;  %829 = vmatmul.mubr.f32.gmra.mrb[8].mxu0 %v477_v54  ;;  %v479_v7 = vmax.f32 %v444_v55, 0.0 }
 0x1d8   : > { %v480_v57 = vmax.f32 %v446_v56, 0.0 }
 0x1da   : > { %v450_v58 = vpop.f32.mrb[8].mxu1  ;;  %721 = vmatprep.mubr.f32.mxu1 %v480_v57  ;;  %834 = vmatprep.mubr.f32.mxu0 %v480_v57 }
 0x1db   : > { %v452_v59 = vpop.f32.mrb[9].mxu1  ;;  %722 = vmatmul.mubr.f32.gmra.mrb[22].mxu1 %v479_v7  ;;  %835 = vmatmul.mubr.f32.gmra.mrb[10].mxu0 %v479_v7  ;;  %v481_v61 = vmax.f32 %v450_v58, 0.0 }
 0x1dc   : > { %v482_v60 = vmax.f32 %v452_v59, 0.0 }
 0x1de   : > { %v456_v62 = vpop.f32.mrb[10].mxu1  ;;  %727 = vmatprep.mubr.f32.mxu1 %v482_v60  ;;  %840 = vmatprep.mubr.f32.mxu0 %v482_v60 }
 0x1df   : > { %v458_v63 = vpop.f32.mrb[11].mxu1  ;;  %728 = vmatmul.mubr.f32.gmra.mrb[24].mxu1 %v481_v61  ;;  %841 = vmatmul.mubr.f32.gmra.mrb[12].mxu0 %v481_v61  ;;  %v483_v1 = vmax.f32 %v456_v62, 0.0 }
 0x1e0   : > { %v484_v0 = vmax.f32 %v458_v63, 0.0 }
 0x1e2   : > { %v462_v2 = vpop.f32.mrb[12].mxu1  ;;  %733 = vmatprep.mubr.f32.mxu1 %v484_v0  ;;  %846 = vmatprep.mubr.f32.mxu0 %v484_v0 }
 0x1e3   : > { %v464_v3 = vpop.f32.mrb[13].mxu1  ;;  %734 = vmatmul.mubr.f32.gmra.mrb[26].mxu1 %v483_v1  ;;  %847 = vmatmul.mubr.f32.gmra.mrb[14].mxu0 %v483_v1  ;;  %v485_v5 = vmax.f32 %v462_v2, 0.0 }
 0x1e4   : > { %v486_v4 = vmax.f32 %v464_v3, 0.0 }
 0x1e6   : > { %v468_v6 = vpop.f32.mrb[14].mxu1  ;;  %739 = vmatprep.mubr.f32.mxu1 %v486_v4  ;;  %852 = vmatprep.mubr.f32.mxu0 %v486_v4 }
 0x1e7   : > { %v470_v8 = vpop.f32.mrb[15].mxu1  ;;  %740 = vmatmul.mubr.f32.gmra.mrb[28].mxu1 %v485_v5  ;;  %853 = vmatmul.mubr.f32.gmra.mrb[16].mxu0 %v485_v5  ;;  %v487_v10 = vmax.f32 %v468_v6, 0.0 }
 0x1e8   : > { %v488_v9 = vmax.f32 %v470_v8, 0.0 }
 0x1ea   : > { %745 = vmatprep.mubr.f32.mxu1 %v488_v9  ;;  %858 = vmatprep.mubr.f32.mxu0 %v488_v9 }
 0x1eb   : > { %746 = vmatmul.mubr.f32.gmra.mrb[30].mxu1 %v487_v10  ;;  %859 = vmatmul.mubr.f32.gmra.mrb[18].mxu0 %v487_v10 }
 0x2a2   : > { %v705_v22 = vpop.f32.mrb[16].mxu1  ;;  %v818_v23 = vpop.f32.mrb[4].mxu0 }
 0x2a3   : > { %v706_v24 = vadd.f32 %v705_v22, %v1667_v18  ;;  %v819_v25 = vadd.f32 %v818_v23, %v1669_v19  ;;  %v707_v26 = vpop.f32.mrb[17].mxu1  ;;  %v820_v27 = vpop.f32.mrb[5].mxu0 }
 0x2a4   : > { %v708_v28 = vadd.f32 %v707_v26, %v1671_v20  ;;  %v821_v29 = vadd.f32 %v820_v27, %v1673_v21 }
 0x2a5   : > { %865 = vst [vmem:[%s1678_s9] sm:$0xff] %v706_v24  ;;  %867 = vst [vmem:[%s1678_s9 + $0x10] sm:$0xff] %v819_v25 }
 0x2a6   : > { %866 = vst [vmem:[%s1678_s9 + $0x8] sm:$0xff] %v708_v28  ;;  %868 = vst [vmem:[%s1678_s9 + $0x18] sm:$0xff] %v821_v29  ;;  %v711_v30 = vpop.f32.mrb[18].mxu1  ;;  %v824_v31 = vpop.f32.mrb[6].mxu0 }
 0x2a7   : > { %v712_v32 = vadd.f32 %v711_v30, %v1667_v18  ;;  %v825_v33 = vadd.f32 %v824_v31, %v1669_v19  ;;  %v713_v34 = vpop.f32.mrb[19].mxu1  ;;  %v826_v35 = vpop.f32.mrb[7].mxu0 }
 0x2a8   : > { %v714_v36 = vadd.f32 %v713_v34, %v1671_v20  ;;  %v827_v37 = vadd.f32 %v826_v35, %v1673_v21 }
 0x2a9   : > { %869 = vst [vmem:[%s1678_s9 + $0x20] sm:$0xff] %v712_v32  ;;  %871 = vst [vmem:[%s1678_s9 + $0x30] sm:$0xff] %v825_v33 }
 0x2aa   : > { %870 = vst [vmem:[%s1678_s9 + $0x28] sm:$0xff] %v714_v36  ;;  %872 = vst [vmem:[%s1678_s9 + $0x38] sm:$0xff] %v827_v37  ;;  %v717_v38 = vpop.f32.mrb[20].mxu1  ;;  %v830_v39 = vpop.f32.mrb[8].mxu0 }
 0x2ab   : > { %v718_v40 = vadd.f32 %v717_v38, %v1667_v18  ;;  %v831_v41 = vadd.f32 %v830_v39, %v1669_v19  ;;  %v719_v42 = vpop.f32.mrb[21].mxu1  ;;  %v832_v43 = vpop.f32.mrb[9].mxu0 }
 0x2ac   : > { %v720_v44 = vadd.f32 %v719_v42, %v1671_v20  ;;  %v833_v45 = vadd.f32 %v832_v43, %v1673_v21 }
 0x2ad   : > { %873 = vst [vmem:[%s1678_s9 + $0x40] sm:$0xff] %v718_v40  ;;  %875 = vst [vmem:[%s1678_s9 + $0x50] sm:$0xff] %v831_v41 }
 0x2ae   : > { %874 = vst [vmem:[%s1678_s9 + $0x48] sm:$0xff] %v720_v44  ;;  %876 = vst [vmem:[%s1678_s9 + $0x58] sm:$0xff] %v833_v45  ;;  %v723_v46 = vpop.f32.mrb[22].mxu1  ;;  %v836_v47 = vpop.f32.mrb[10].mxu0 }
 0x2af   : > { %v724_v48 = vadd.f32 %v723_v46, %v1667_v18  ;;  %v837_v49 = vadd.f32 %v836_v47, %v1669_v19  ;;  %v725_v50 = vpop.f32.mrb[23].mxu1  ;;  %v838_v51 = vpop.f32.mrb[11].mxu0 }
 0x2b0   : > { %v726_v52 = vadd.f32 %v725_v50, %v1671_v20  ;;  %v839_v53 = vadd.f32 %v838_v51, %v1673_v21 }
 0x2b1   : > { %877 = vst [vmem:[%s1678_s9 + $0x60] sm:$0xff] %v724_v48  ;;  %879 = vst [vmem:[%s1678_s9 + $0x70] sm:$0xff] %v837_v49 }
 0x2b2   : > { %878 = vst [vmem:[%s1678_s9 + $0x68] sm:$0xff] %v726_v52  ;;  %880 = vst [vmem:[%s1678_s9 + $0x78] sm:$0xff] %v839_v53  ;;  %v729_v54 = vpop.f32.mrb[24].mxu1  ;;  %v842_v55 = vpop.f32.mrb[12].mxu0 }
 0x2b3   : > { %v730_v56 = vadd.f32 %v729_v54, %v1667_v18  ;;  %v843_v57 = vadd.f32 %v842_v55, %v1669_v19  ;;  %v731_v7 = vpop.f32.mrb[25].mxu1  ;;  %v844_v58 = vpop.f32.mrb[13].mxu0 }
 0x2b4   : > { %v732_v59 = vadd.f32 %v731_v7, %v1671_v20  ;;  %v845_v60 = vadd.f32 %v844_v58, %v1673_v21 }
 0x2b5   : > { %881 = vst [vmem:[%s1678_s9 + $0x80] sm:$0xff] %v730_v56  ;;  %883 = vst [vmem:[%s1678_s9 + $0x90] sm:$0xff] %v843_v57 }
 0x2b6   : > { %882 = vst [vmem:[%s1678_s9 + $0x88] sm:$0xff] %v732_v59  ;;  %884 = vst [vmem:[%s1678_s9 + $0x98] sm:$0xff] %v845_v60  ;;  %v735_v61 = vpop.f32.mrb[26].mxu1  ;;  %v848_v62 = vpop.f32.mrb[14].mxu0 }
 0x2b7   : > { %v736_v63 = vadd.f32 %v735_v61, %v1667_v18  ;;  %v849_v0 = vadd.f32 %v848_v62, %v1669_v19  ;;  %v737_v1 = vpop.f32.mrb[27].mxu1  ;;  %v850_v2 = vpop.f32.mrb[15].mxu0 }
 0x2b8   : > { %v738_v3 = vadd.f32 %v737_v1, %v1671_v20  ;;  %v851_v4 = vadd.f32 %v850_v2, %v1673_v21 }
 0x2b9   : > { %885 = vst [vmem:[%s1678_s9 + $0xa0] sm:$0xff] %v736_v63  ;;  %887 = vst [vmem:[%s1678_s9 + $0xb0] sm:$0xff] %v849_v0 }
 0x2ba   : > { %886 = vst [vmem:[%s1678_s9 + $0xa8] sm:$0xff] %v738_v3  ;;  %888 = vst [vmem:[%s1678_s9 + $0xb8] sm:$0xff] %v851_v4  ;;  %v741_v5 = vpop.f32.mrb[28].mxu1  ;;  %v854_v6 = vpop.f32.mrb[16].mxu0 }
 0x2bb   : > { %v742_v8 = vadd.f32 %v741_v5, %v1667_v18  ;;  %v855_v9 = vadd.f32 %v854_v6, %v1669_v19  ;;  %v743_v10 = vpop.f32.mrb[29].mxu1  ;;  %v856_v11 = vpop.f32.mrb[17].mxu0 }
 0x2bc   : > { %v744_v12 = vadd.f32 %v743_v10, %v1671_v20  ;;  %v857_v13 = vadd.f32 %v856_v11, %v1673_v21 }
 0x2bd   : > { %889 = vst [vmem:[%s1678_s9 + $0xc0] sm:$0xff] %v742_v8  ;;  %891 = vst [vmem:[%s1678_s9 + $0xd0] sm:$0xff] %v855_v9 }
 0x2be   : > { %890 = vst [vmem:[%s1678_s9 + $0xc8] sm:$0xff] %v744_v12  ;;  %892 = vst [vmem:[%s1678_s9 + $0xd8] sm:$0xff] %v857_v13  ;;  %v747_v14 = vpop.f32.mrb[30].mxu1  ;;  %v860_v15 = vpop.f32.mrb[18].mxu0 }
 0x2bf   : > { %v748_v16 = vadd.f32 %v747_v14, %v1667_v18  ;;  %v861_v17 = vadd.f32 %v860_v15, %v1669_v19  ;;  %v749_v22 = vpop.f32.mrb[31].mxu1  ;;  %v862_v23 = vpop.f32.mrb[19].mxu0 }
 0x2c0   : > { %v750_v24 = vadd.f32 %v749_v22, %v1671_v20  ;;  %v863_v25 = vadd.f32 %v862_v23, %v1673_v21 }
 0x2c1   : > { %893 = vst [vmem:[%s1678_s9 + $0xe0] sm:$0xff] %v748_v16  ;;  %895 = vst [vmem:[%s1678_s9 + $0xf0] sm:$0xff] %v861_v17 }
 0x2c2   : > { %894 = vst [vmem:[%s1678_s9 + $0xe8] sm:$0xff] %v750_v24  ;;  %896 = vst [vmem:[%s1678_s9 + $0xf8] sm:$0xff] %v863_v25 }
 0x2c3 PF: > { %s15_s18 = sadd.s32 1, %s1138_s18  }
 0x2c4   : > { %p12_p4 = scmp.ge.s32.totalorder %s15_s18, 4  }
 0x2c6   :  { %14 = sbr.rel (!%p12_p4) target bundleno = 1 (0x1), region = 70 }

</bundles_post_ra>
